<compile_context>
chip_gen: v7x
topology: tpu7x:2x2x1
jax: 0.10.0
libtpu: 0.0.40
codegen_flags: <defaults>
</compile_context>

<pallas_src>
import jax
import jax.numpy as jnp
from jax.experimental import pallas as pl
from jax.experimental.pallas import tpu as pltpu


def _rssnn_ranking_kernel(xl_ref, xr_ref,
                          w1_ref, b1_ref, w2_ref, b2_ref, w3_ref, b3_ref,
                          ol_ref, or_ref):
    """Feature-major fused MLP on a (6, TM) batch tile, for left AND right."""
    w1 = w1_ref[...]   # (100, 6)
    b1 = b1_ref[...]   # (100, 1)
    w2 = w2_ref[...]   # (50, 100)
    b2 = b2_ref[...]   # (50, 1)
    w3 = w3_ref[...]   # (1, 50)
    b3 = b3_ref[...]   # (1, 1)

    def mlp(x):
        # x: (6, TM) — batch on lanes, features on sublanes.
        h1 = jnp.dot(w1, x, preferred_element_type=jnp.float32) + b1   # (100, TM)
        h1 = jnp.maximum(h1, 0.0)
        # Dropout(0.5): identity in eval mode.
        h2 = jnp.dot(w2, h1, preferred_element_type=jnp.float32) + b2  # (50, TM)
        h2 = jnp.maximum(h2, 0.0)
        # Dropout(0.5): identity in eval mode.
        return jnp.dot(w3, h2, preferred_element_type=jnp.float32) + b3  # (1, TM)

    ol_ref[...] = mlp(xl_ref[...]).astype(ol_ref.dtype)
    or_ref[...] = mlp(xr_ref[...]).astype(or_ref.dtype)


def ranking_pair(left, right, params, block_m=512):
    """Apply the ranking MLP to `left` and `right` (each (M, 6)) in one call.

    Returns (rank_left, rank_right), each (M, 1) float32.
    """
    M = left.shape[0]
    w1, b1 = params["w1"], params["b1"]
    w2, b2 = params["w2"], params["b2"]
    w3, b3 = params["w3"], params["b3"]

    # Feature-major: batch rides the 128-lane axis.
    xl = left.T    # (6, M)
    xr = right.T   # (6, M)

    if M <= block_m:
        tm = M                      # single full-array tile (small batches)
        m_pad = M
    else:
        tm = block_m                # multiple of 128 -> lane-aligned tiles
        m_pad = -(-M // tm) * tm
        if m_pad != M:
            pad = ((0, 0), (0, m_pad - M))
            xl = jnp.pad(xl, pad)
            xr = jnp.pad(xr, pad)

    grid = (m_pad // tm,)

    x_spec = pl.BlockSpec((6, tm), lambda i: (0, i))
    o_spec = pl.BlockSpec((1, tm), lambda i: (0, i))

    def resident(a):  # full-array block, same for every grid step -> stays in VMEM
        return pl.BlockSpec(a.shape, lambda i: (0, 0))

    n_mac = 6 * 100 + 100 * 50 + 50 * 1
    n_param = w1.size + b1.size + w2.size + b2.size + w3.size + b3.size
    cost = pl.CostEstimate(
        flops=2 * 2 * m_pad * n_mac,                 # two sides, 2 flops/MAC
        transcendentals=0,
        bytes_accessed=4 * (2 * 6 * m_pad + 2 * m_pad + n_param),
    )

    out_l, out_r = pl.pallas_call(
        _rssnn_ranking_kernel,
        out_shape=(jax.ShapeDtypeStruct((1, m_pad), jnp.float32),
                   jax.ShapeDtypeStruct((1, m_pad), jnp.float32)),
        grid=grid,
        in_specs=[x_spec, x_spec,
                  resident(w1), resident(b1),
                  resident(w2), resident(b2),
                  resident(w3), resident(b3)],
        out_specs=(o_spec, o_spec),
        compiler_params=pltpu.CompilerParams(
            dimension_semantics=("parallel",)),
        cost_estimate=cost,
    )(xl, xr, w1, b1, w2, b2, w3, b3)

    rank_left = out_l[0, :M].reshape(M, 1)
    rank_right = out_r[0, :M].reshape(M, 1)
    return rank_left, rank_right


def init_params(key):
    """Same shapes/init as the PyTorch ranking head; weights stored (out, in)."""
    ks = jax.random.split(key, 6)

    def u(k, shape, fan_in):
        bound = 1.0 / jnp.sqrt(jnp.float32(fan_in))
        return jax.random.uniform(k, shape, jnp.float32, -bound, bound)

    return {
        "w1": u(ks[0], (100, 6), 6),    "b1": u(ks[1], (100, 1), 6),
        "w2": u(ks[2], (50, 100), 100), "b2": u(ks[3], (50, 1), 100),
        "w3": u(ks[4], (1, 50), 50),    "b3": u(ks[5], (1, 1), 50),
    }


@jax.jit
def rssnn_forward(params, left, right):
    # left, right: (B, 6) -> (ranking(left), ranking(right)), each (B, 1).
    # TODO(synk): sscnn_pred = sscnn.fuse(left, right) — external submodule with
    # no specified architecture; cannot be translated here.
    return ranking_pair(left, right, params)


def _ranking_ref(params, x):
    """Pure-JAX reference for correctness checking."""
    h1 = jnp.maximum(x @ params["w1"].T + params["b1"][:, 0], 0.0)
    h2 = jnp.maximum(h1 @ params["w2"].T + params["b2"][:, 0], 0.0)
    return h2 @ params["w3"].T + params["b3"][:, 0]


if __name__ == "__main__":
    key = jax.random.PRNGKey(0)
    pkey, lkey, rkey = jax.random.split(key, 3)
    params = init_params(pkey)

    B = 16
    left = jax.random.normal(lkey, (B, 6), dtype=jnp.float32)
    right = jax.random.normal(rkey, (B, 6), dtype=jnp.float32)

    rank_left, rank_right = rssnn_forward(params, left, right)
    jax.block_until_ready((rank_left, rank_right))

    assert rank_left.shape == (B, 1) and rank_left.dtype == jnp.float32
    assert rank_right.shape == (B, 1) and rank_right.dtype == jnp.float32

    ref_left = _ranking_ref(params, left)
    ref_right = _ranking_ref(params, right)
    assert jnp.allclose(rank_left, ref_left, atol=1e-5, rtol=1e-5)
    assert jnp.allclose(rank_right, ref_right, atol=1e-5, rtol=1e-5)

    print("KERNEL_OK")
</pallas_src>

<mosaic_0001>
module attributes {stable_mosaic.version = 11 : i64} {
  func.func @_rssnn_ranking_kernel(%arg0: i32, %arg1: memref<6x16xf32, #tpu.memory_space<vmem>>, %arg2: memref<6x16xf32, #tpu.memory_space<vmem>>, %arg3: memref<100x6xf32, #tpu.memory_space<vmem>>, %arg4: memref<100x1xf32, #tpu.memory_space<vmem>>, %arg5: memref<50x100xf32, #tpu.memory_space<vmem>>, %arg6: memref<50x1xf32, #tpu.memory_space<vmem>>, %arg7: memref<1x50xf32, #tpu.memory_space<vmem>>, %arg8: memref<1x1xf32, #tpu.memory_space<vmem>>, %arg9: memref<1x16xf32, #tpu.memory_space<vmem>>, %arg10: memref<1x16xf32, #tpu.memory_space<vmem>>) attributes {dimension_semantics = [#tpu.dimension_semantics<parallel>], iteration_bounds = array<i64: 1>, scalar_prefetch = 0 : i64, scratch_operands = 0 : i64, tpu.core_type = #tpu.core_type<tc>, window_params = [{transform_indices = @transform_0, window_bounds = array<i64: 6, 16>}, {transform_indices = @transform_1, window_bounds = array<i64: 6, 16>}, {pipeline_mode = #tpu.pipeline_mode<synchronous>, transform_indices = @transform_2, window_bounds = array<i64: 100, 6>}, {pipeline_mode = #tpu.pipeline_mode<synchronous>, transform_indices = @transform_3, window_bounds = array<i64: 100, 1>}, {pipeline_mode = #tpu.pipeline_mode<synchronous>, transform_indices = @transform_4, window_bounds = array<i64: 50, 100>}, {pipeline_mode = #tpu.pipeline_mode<synchronous>, transform_indices = @transform_5, window_bounds = array<i64: 50, 1>}, {pipeline_mode = #tpu.pipeline_mode<synchronous>, transform_indices = @transform_6, window_bounds = array<i64: 1, 50>}, {pipeline_mode = #tpu.pipeline_mode<synchronous>, transform_indices = @transform_7, window_bounds = array<i64: 1, 1>}, {transform_indices = @transform_8, window_bounds = array<i64: 1, 16>}, {transform_indices = @transform_9, window_bounds = array<i64: 1, 16>}]} {
    %c0 = arith.constant 0 : index
    %c0_0 = arith.constant 0 : index
    %0 = vector.load %arg3[%c0, %c0_0] : memref<100x6xf32, #tpu.memory_space<vmem>>, vector<100x6xf32>
    %c0_1 = arith.constant 0 : index
    %c0_2 = arith.constant 0 : index
    %1 = vector.load %arg4[%c0_1, %c0_2] : memref<100x1xf32, #tpu.memory_space<vmem>>, vector<100x1xf32>
    %c0_3 = arith.constant 0 : index
    %c0_4 = arith.constant 0 : index
    %2 = vector.load %arg5[%c0_3, %c0_4] : memref<50x100xf32, #tpu.memory_space<vmem>>, vector<50x100xf32>
    %c0_5 = arith.constant 0 : index
    %c0_6 = arith.constant 0 : index
    %3 = vector.load %arg6[%c0_5, %c0_6] : memref<50x1xf32, #tpu.memory_space<vmem>>, vector<50x1xf32>
    %c0_7 = arith.constant 0 : index
    %c0_8 = arith.constant 0 : index
    %4 = vector.load %arg7[%c0_7, %c0_8] : memref<1x50xf32, #tpu.memory_space<vmem>>, vector<1x50xf32>
    %c0_9 = arith.constant 0 : index
    %c0_10 = arith.constant 0 : index
    %5 = vector.load %arg8[%c0_9, %c0_10] : memref<1x1xf32, #tpu.memory_space<vmem>>, vector<1x1xf32>
    %c0_11 = arith.constant 0 : index
    %c0_12 = arith.constant 0 : index
    %6 = vector.load %arg1[%c0_11, %c0_12] : memref<6x16xf32, #tpu.memory_space<vmem>>, vector<6x16xf32>
    %cst = arith.constant dense<0.000000e+00> : vector<100x16xf32>
    %7 = tpu.matmul %0, %6, %cst {dimension_numbers = #tpu.dot_dimension_numbers<[1], [0], [0], [1], [0, 0, 1, 1], [], []>} : vector<100x6xf32>, vector<6x16xf32>, vector<100x16xf32> -> vector<100x16xf32>
    %8 = vector.broadcast %1 : vector<100x1xf32> to vector<100x16xf32>
    %9 = arith.addf %7, %8 : vector<100x16xf32>
    %cst_13 = arith.constant 0.000000e+00 : f32
    %10 = vector.broadcast %cst_13 : f32 to vector<100x16xf32>
    %11 = arith.maximumf %9, %10 : vector<100x16xf32>
    %cst_14 = arith.constant dense<0.000000e+00> : vector<50x16xf32>
    %12 = tpu.matmul %2, %11, %cst_14 {dimension_numbers = #tpu.dot_dimension_numbers<[1], [0], [0], [1], [0, 0, 1, 1], [], []>} : vector<50x100xf32>, vector<100x16xf32>, vector<50x16xf32> -> vector<50x16xf32>
    %13 = vector.broadcast %3 : vector<50x1xf32> to vector<50x16xf32>
    %14 = arith.addf %12, %13 : vector<50x16xf32>
    %cst_15 = arith.constant 0.000000e+00 : f32
    %15 = vector.broadcast %cst_15 : f32 to vector<50x16xf32>
    %16 = arith.maximumf %14, %15 : vector<50x16xf32>
    %cst_16 = arith.constant dense<0.000000e+00> : vector<1x16xf32>
    %17 = tpu.matmul %4, %16, %cst_16 {dimension_numbers = #tpu.dot_dimension_numbers<[1], [0], [0], [1], [0, 0, 1, 1], [], []>} : vector<1x50xf32>, vector<50x16xf32>, vector<1x16xf32> -> vector<1x16xf32>
    %18 = vector.broadcast %5 : vector<1x1xf32> to vector<1x16xf32>
    %19 = arith.addf %17, %18 : vector<1x16xf32>
    %c0_17 = arith.constant 0 : index
    %c0_18 = arith.constant 0 : index
    %20 = vector.load %arg9[%c0_17, %c0_18] : memref<1x16xf32, #tpu.memory_space<vmem>>, vector<1x16xf32>
    tpu.vector_store %arg9[%c0_17, %c0_18], %19 {strides = array<i32>} : memref<1x16xf32, #tpu.memory_space<vmem>>, vector<1x16xf32>,
    %c0_19 = arith.constant 0 : index
    %c0_20 = arith.constant 0 : index
    %21 = vector.load %arg2[%c0_19, %c0_20] : memref<6x16xf32, #tpu.memory_space<vmem>>, vector<6x16xf32>
    %cst_21 = arith.constant dense<0.000000e+00> : vector<100x16xf32>
    %22 = tpu.matmul %0, %21, %cst_21 {dimension_numbers = #tpu.dot_dimension_numbers<[1], [0], [0], [1], [0, 0, 1, 1], [], []>} : vector<100x6xf32>, vector<6x16xf32>, vector<100x16xf32> -> vector<100x16xf32>
    %23 = vector.broadcast %1 : vector<100x1xf32> to vector<100x16xf32>
    %24 = arith.addf %22, %23 : vector<100x16xf32>
    %cst_22 = arith.constant 0.000000e+00 : f32
    %25 = vector.broadcast %cst_22 : f32 to vector<100x16xf32>
    %26 = arith.maximumf %24, %25 : vector<100x16xf32>
    %cst_23 = arith.constant dense<0.000000e+00> : vector<50x16xf32>
    %27 = tpu.matmul %2, %26, %cst_23 {dimension_numbers = #tpu.dot_dimension_numbers<[1], [0], [0], [1], [0, 0, 1, 1], [], []>} : vector<50x100xf32>, vector<100x16xf32>, vector<50x16xf32> -> vector<50x16xf32>
    %28 = vector.broadcast %3 : vector<50x1xf32> to vector<50x16xf32>
    %29 = arith.addf %27, %28 : vector<50x16xf32>
    %cst_24 = arith.constant 0.000000e+00 : f32
    %30 = vector.broadcast %cst_24 : f32 to vector<50x16xf32>
    %31 = arith.maximumf %29, %30 : vector<50x16xf32>
    %cst_25 = arith.constant dense<0.000000e+00> : vector<1x16xf32>
    %32 = tpu.matmul %4, %31, %cst_25 {dimension_numbers = #tpu.dot_dimension_numbers<[1], [0], [0], [1], [0, 0, 1, 1], [], []>} : vector<1x50xf32>, vector<50x16xf32>, vector<1x16xf32> -> vector<1x16xf32>
    %33 = vector.broadcast %5 : vector<1x1xf32> to vector<1x16xf32>
    %34 = arith.addf %32, %33 : vector<1x16xf32>
    %c0_26 = arith.constant 0 : index
    %c0_27 = arith.constant 0 : index
    %35 = vector.load %arg10[%c0_26, %c0_27] : memref<1x16xf32, #tpu.memory_space<vmem>>, vector<1x16xf32>
    tpu.vector_store %arg10[%c0_26, %c0_27], %34 {strides = array<i32>} : memref<1x16xf32, #tpu.memory_space<vmem>>, vector<1x16xf32>,
    return
  }
  func.func @transform_0(%arg0: i32) -> (i32, i32) {
    %c0_i32 = arith.constant 0 : i32
    %c0_i32_0 = arith.constant 0 : i32
    return %c0_i32, %arg0 : i32, i32
  }
  func.func @transform_1(%arg0: i32) -> (i32, i32) {
    %c0_i32 = arith.constant 0 : i32
    %c0_i32_0 = arith.constant 0 : i32
    return %c0_i32, %arg0 : i32, i32
  }
  func.func @transform_2(%arg0: i32) -> (i32, i32) {
    %c0_i32 = arith.constant 0 : i32
    %c0_i32_0 = arith.constant 0 : i32
    %c0_i32_1 = arith.constant 0 : i32
    return %c0_i32, %c0_i32_0 : i32, i32
  }
  func.func @transform_3(%arg0: i32) -> (i32, i32) {
    %c0_i32 = arith.constant 0 : i32
    %c0_i32_0 = arith.constant 0 : i32
    %c0_i32_1 = arith.constant 0 : i32
    return %c0_i32, %c0_i32_0 : i32, i32
  }
  func.func @transform_4(%arg0: i32) -> (i32, i32) {
    %c0_i32 = arith.constant 0 : i32
    %c0_i32_0 = arith.constant 0 : i32
    %c0_i32_1 = arith.constant 0 : i32
    return %c0_i32, %c0_i32_0 : i32, i32
  }
  func.func @transform_5(%arg0: i32) -> (i32, i32) {
    %c0_i32 = arith.constant 0 : i32
    %c0_i32_0 = arith.constant 0 : i32
    %c0_i32_1 = arith.constant 0 : i32
    return %c0_i32, %c0_i32_0 : i32, i32
  }
  func.func @transform_6(%arg0: i32) -> (i32, i32) {
    %c0_i32 = arith.constant 0 : i32
    %c0_i32_0 = arith.constant 0 : i32
    %c0_i32_1 = arith.constant 0 : i32
    return %c0_i32, %c0_i32_0 : i32, i32
  }
  func.func @transform_7(%arg0: i32) -> (i32, i32) {
    %c0_i32 = arith.constant 0 : i32
    %c0_i32_0 = arith.constant 0 : i32
    %c0_i32_1 = arith.constant 0 : i32
    return %c0_i32, %c0_i32_0 : i32, i32
  }
  func.func @transform_8(%arg0: i32) -> (i32, i32) {
    %c0_i32 = arith.constant 0 : i32
    %c0_i32_0 = arith.constant 0 : i32
    return %c0_i32, %arg0 : i32, i32
  }
  func.func @transform_9(%arg0: i32) -> (i32, i32) {
    %c0_i32 = arith.constant 0 : i32
    %c0_i32_0 = arith.constant 0 : i32
    return %c0_i32, %arg0 : i32, i32
  }
}

</mosaic_0001>

<bundles_post_ra>
// kernel: rssnn_forward.1
= control target key start
LH: loop header
LB: loop body
LE: loop exit
PB: predicated region body
PF: predicated region fallthrough
CT: control target
= control target key end

     0   :  { %s1936_s0 = inlined_call_operand.vmem [shape: f32[6,16], index: 0, kind: input, shape index: {}]   ;;  %s1937_s1 = inlined_call_operand.vmem [shape: f32[6,16], index: 1, kind: input, shape index: {}]   ;;  %s1938_s2 = inlined_call_operand.vmem [shape: f32[100,6], index: 2, kind: input, shape index: {}]   ;;  %s1939_s3 = inlined_call_operand.vmem [shape: f32[100,1], index: 3, kind: input, shape index: {}]   ;;  %s1940_s4 = inlined_call_operand.vmem [shape: f32[50,100], index: 4, kind: input, shape index: {}]   ;;  %s1941_s5 = inlined_call_operand.vmem [shape: f32[50,1], index: 5, kind: input, shape index: {}]   ;;  %s1942_s6 = inlined_call_operand.vmem [shape: f32[1,50], index: 6, kind: input, shape index: {}]   ;;  %s1943_s7 = inlined_call_operand.<no memory space> [shape: f32[1,1], index: 7, kind: input, shape index: {}]   ;;  %s1944_s8 = inlined_call_operand.hbm [shape: f32[1,16], index: 8, kind: output, shape index: {0}]   ;;  %s1945_s9 = inlined_call_operand.hbm [shape: f32[1,16], index: 9, kind: output, shape index: {1}]  }
   0x1   :  { %v15_v0 = vstv %s1943_s7 }
   0x2   :  { %16 = vst [vmem:[#allocation2] sm:$0x1] %v15_v0 }
   0x3   :  { %17 = vsyncpa [#allocation4], 0  ;;  %v77_v1 = vld [vmem:[%s1936_s0] sm:$0x3f]  ;;  %vm183_vm0 = vcmask 1045504   ;;  %v1398_v3 = vmov 0.0  }
   0x4   :  { %v1463_v2 = vld [vmem:[%s1938_s2] sm:$0xff]  ;;  %1078 = vmatprep.subr.mxu0 %v1398_v3  ;;  %vm1399_vm1 = vmmov 0   ;;  %vm143_vm2 = vcmask 48128   ;;  %v1400_v4 = vmov 0   ;;  %v1476_v5 = vld [vmem:[%s1938_s2 + $0x8] sm:$0xff]  ;;  %v50_v7 = vld [vmem:[%s1939_s3 + $0x10] sm:$0xff] }
   0x5   :  { %1080 = vmatprep.mubr.msk.f32.mxu0 %vm1399_vm1, %v1398_v3  ;;  %1079 = vmatpush3.msk.msra.mxu0 %vm183_vm0, %v77_v1  ;;  %v48_v6 = vld [vmem:[%s1939_s3] sm:$0xff]  ;;  %v49_v8 = vld [vmem:[%s1939_s3 + $0x8] sm:$0xff]  ;;  %v51_v9 = vld [vmem:[%s1939_s3 + $0x18] sm:$0xff] }
   0x6   :  { %1348 = vset.pattern.permute.xlu0 %v1400_v4  ;;  %1081 = vmatmul.mubr.msk.f32.vlgmr.msra.gmra.mrb[0].mxu0 %vm143_vm2, %v1463_v2  ;;  %v1499_v10 = vld [vmem:[%s1938_s2 + $0x10] sm:$0xff]  ;;  %v52_v11 = vld [vmem:[%s1939_s3 + $0x20] sm:$0xff]  ;;  %v53_v12 = vld [vmem:[%s1939_s3 + $0x28] sm:$0xff] }
   0x7   :  { %1349 = vset.pattern.permute.xlu1 %v1400_v4  ;;  %1083 = vmatprep.mubr.msk.f32.mxu0 %vm1399_vm1, %v1398_v3  ;;  %v1514_v13 = vld [vmem:[%s1938_s2 + $0x18] sm:$0xff] }
   0x8   :  { %1145 = vmatprep.mubr.msk.f32.mxu1 %vm1399_vm1, %v1398_v3  ;;  %80 = vperm.xlu0 %1348, %v48_v6  }
   0x9   :  { %90 = vperm.xlu1 %1349, %v50_v7  }
   0xa   :  { %1084 = vmatmul.mubr.msk.f32.gmra.mrb[2].mxu0 %vm143_vm2, %v1476_v5 }
   0xb   :  { %1086 = vmatprep.mubr.msk.f32.mxu0 %vm1399_vm1, %v1398_v3 }
   0xc   :  { %85 = vperm.xlu0 %1348, %v49_v8  }
   0xd   :  { %95 = vperm.xlu1 %1349, %v51_v9  }
   0xe   :  { %1087 = vmatmul.mubr.msk.f32.gmra.mrb[4].mxu0 %vm143_vm2, %v1499_v10 }
   0xf   :  { %1089 = vmatprep.mubr.msk.f32.mxu0 %vm1399_vm1, %v1398_v3 }
  0x10   :  { %18 = vsyncpa [#allocation6], 0  ;;  %100 = vperm.xlu0 %1348, %v52_v11   ;;  %v54_v14 = vld [vmem:[%s1939_s3 + $0x30] sm:$0xff]  ;;  %v55_v15 = vld [vmem:[%s1939_s3 + $0x38] sm:$0xff]  ;;  %v1401_v38 = vmov 0.0|0.0   ;;  %vm387_vm3 = vcmask 1043456  }
  0x11   :  { %105 = vperm.xlu1 %1349, %v53_v12   ;;  %v1529_v16 = vld [vmem:[%s1938_s2 + $0x20] sm:$0xff]  ;;  %v57_v18 = vld [vmem:[%s1939_s3 + $0x48] sm:$0xff]  ;;  %v58_v20 = vld [vmem:[%s1939_s3 + $0x50] sm:$0xff]  ;;  %1288 = vmatprep.subr.bf16.mxu1 %v1401_v38  ;;  %vm365_vm4 = vcmask 818176   ;;  %vm511_vm5 = vcmask 1041408   ;;  %vm507_vm6 = vcmask 408576  }
  0x12   :  { %1090 = vmatmul.mubr.msk.f32.gmra.mrb[6].mxu0 %vm143_vm2, %v1514_v13  ;;  %v56_v17 = vld [vmem:[%s1939_s3 + $0x40] sm:$0xff]  ;;  %v1544_v19 = vld [vmem:[%s1938_s2 + $0x28] sm:$0xff]  ;;  %v59_v21 = vld [vmem:[%s1939_s3 + $0x58] sm:$0xff]  ;;  %1306 = vmatprep.subr.bf16.mxu0 %v1401_v38  ;;  %vm585_vm7 = vcmask 122880  }
  0x13   :  { %1092 = vmatprep.mubr.msk.f32.mxu0 %vm1399_vm1, %v1398_v3  ;;  %v1559_v22 = vld [vmem:[%s1938_s2 + $0x30] sm:$0xff]  ;;  %v60_v23 = vld [vmem:[%s1939_s3 + $0x60] sm:$0xf]  ;;  %v1574_v25 = vld [vmem:[%s1938_s2 + $0x38] sm:$0xff] }
  0x14   :  { %110 = vperm.xlu0 %1348, %v54_v14   ;;  %v68_v24 = vld [vmem:[%s1941_s5] sm:$0xff]  ;;  %v69_v26 = vld [vmem:[%s1941_s5 + $0x8] sm:$0xff]  ;;  %v70_v27 = vld [vmem:[%s1941_s5 + $0x10] sm:$0xff] }
  0x15   :  { %115 = vperm.xlu1 %1349, %v55_v15   ;;  %v1589_v28 = vld [vmem:[%s1938_s2 + $0x40] sm:$0xff]  ;;  %v71_v29 = vld [vmem:[%s1941_s5 + $0x18] sm:$0xff]  ;;  %v1604_v31 = vld [vmem:[%s1938_s2 + $0x48] sm:$0xff] }
  0x16   :  { %1093 = vmatmul.mubr.msk.f32.gmra.mrb[8].mxu0 %vm143_vm2, %v1529_v16  ;;  %v72_v30 = vld [vmem:[%s1941_s5 + $0x20] sm:$0xff]  ;;  %v73_v32 = vld [vmem:[%s1941_s5 + $0x28] sm:$0xff]  ;;  %v74_v33 = vld [vmem:[%s1941_s5 + $0x30] sm:$0x3] }
  0x17   :  { %1095 = vmatprep.mubr.msk.f32.mxu0 %vm1399_vm1, %v1398_v3  ;;  %v1619_v34 = vld [vmem:[%s1938_s2 + $0x50] sm:$0xff]  ;;  %v76_v35 = vld [vmem:[#allocation2] sm:$0x1]  ;;  %v1628_v36 = vld [vmem:[%s1938_s2 + $0x58] sm:$0xff] }
  0x18   :  { %120 = vperm.xlu0 %1348, %v56_v17   ;;  %v1637_v37 = vld [vmem:[%s1938_s2 + $0x60] sm:$0xf] }
  0x19   :  { %125 = vperm.xlu1 %1349, %v57_v18  }
  0x1a   :  { %1096 = vmatmul.mubr.msk.f32.gmra.mrb[10].mxu0 %vm143_vm2, %v1544_v19 }
  0x1b   :  { %1098 = vmatprep.mubr.msk.f32.mxu0 %vm1399_vm1, %v1398_v3 }
  0x1c   :  { %130 = vperm.xlu0 %1348, %v58_v20  }
  0x1d   :  { %135 = vperm.xlu1 %1349, %v59_v21  }
  0x1e   :  { %1099 = vmatmul.mubr.msk.f32.gmra.mrb[12].mxu0 %vm143_vm2, %v1559_v22 }
  0x1f   :  { %1101 = vmatprep.mubr.msk.f32.mxu0 %vm1399_vm1, %v1398_v3 }
  0x20   :  { %140 = vperm.xlu0 %1348, %v60_v23  }
  0x21   :  { %332 = vperm.xlu1 %1349, %v68_v24  }
  0x22   :  { %1102 = vmatmul.mubr.msk.f32.gmra.mrb[14].mxu0 %vm143_vm2, %v1574_v25 }
  0x23   :  { %1104 = vmatprep.mubr.msk.f32.mxu0 %vm1399_vm1, %v1398_v3 }
  0x24   :  { %337 = vperm.xlu0 %1348, %v69_v26  }
  0x25   :  { %342 = vperm.xlu1 %1349, %v70_v27  }
  0x26   :  { %1105 = vmatmul.mubr.msk.f32.gmra.mrb[16].mxu0 %vm143_vm2, %v1589_v28 }
  0x27   :  { %1107 = vmatprep.mubr.msk.f32.mxu0 %vm1399_vm1, %v1398_v3 }
  0x28   :  { %347 = vperm.xlu0 %1348, %v71_v29  }
  0x29   :  { %352 = vperm.xlu1 %1349, %v72_v30  }
  0x2a   :  { %1108 = vmatmul.mubr.msk.f32.gmra.mrb[18].mxu0 %vm143_vm2, %v1604_v31 }
  0x2b   :  { %1110 = vmatprep.mubr.msk.f32.mxu0 %vm1399_vm1, %v1398_v3 }
  0x2c   :  { %357 = vperm.xlu0 %1348, %v73_v32  }
  0x2d   :  { %362 = vperm.xlu1 %1349, %v74_v33  }
  0x2e   :  { %1111 = vmatmul.mubr.msk.f32.gmra.mrb[20].mxu0 %vm143_vm2, %v1619_v34 }
  0x2f   :  { %1113 = vmatprep.mubr.msk.f32.mxu0 %vm1399_vm1, %v1398_v3 }
  0x30   :  { %500 = vperm.xlu0 %1348, %v76_v35  }
  0x32   :  { %1114 = vmatmul.mubr.msk.f32.gmra.mrb[22].mxu0 %vm143_vm2, %v1628_v36 }
  0x33   :  { %1116 = vmatprep.mubr.msk.f32.mxu0 %vm1399_vm1, %v1398_v3 }
  0x36   :  { %1117 = vmatmul.mubr.msk.f32.gmra.mrb[24].mxu0 %vm143_vm2, %v1637_v37 }
  0x37   :  { %1180 = vmatprep.mubr.msk.f32.mxu0 %vm1399_vm1, %v1398_v3 }
  0x87   :  { %v1645_v39 = vpop.permute.xlu0 %80 }
  0x88   :  { %v1651_v47 = vpop.permute.xlu1 %90 }
  0x8b   :  { %v1648_v43 = vpop.permute.xlu0 %85 }
  0x8c   :  { %v1654_v54 = vpop.permute.xlu1 %95 }
  0x8f   :  { %v1658_v63 = vpop.permute.xlu0 %100 }
  0x90   :  { %v1661_v1 = vpop.permute.xlu1 %105 }
  0x93   :  { %v1665_v15 = vpop.permute.xlu0 %110 }
  0x94   :  { %v1668_v18 = vpop.permute.xlu1 %115 }
  0x97   :  { %v1672_v32 = vpop.permute.xlu0 %120 }
  0x98   :  { %v1675_v35 = vpop.permute.xlu1 %125 }
  0xd9   :  { %v253_v40 = vpop.f32.mrb[0].mxu0 }
  0xda   :  { %v1082_v41 = vpop.f32.mrb[1].mxu0  ;;  %v254_v42 = vadd.f32 %v253_v40, %v1645_v39 }
  0xdc   :  { %v317_v48 = vmax.f32 %v254_v42, 0.0 }
  0xdd   :  { %v258_v44 = vpop.f32.mrb[2].mxu0 }
  0xde   :  { %v259_v45 = vadd.f32 %v258_v44, %v1648_v43  ;;  %v1085_v46 = vpop.f32.mrb[3].mxu0 }
  0xe0   :  { %v318_v49 = vmax.f32 %v259_v45, 0.0 }
  0xe1   :  { %v263_v50 = vpop.f32.mrb[4].mxu0 }
  0xe2   :  { %v1088_v51 = vpop.f32.mrb[5].mxu0  ;;  %v1289_v52 = vpack.c.bf16 %v318_v49, %v317_v48  ;;  %v264_v53 = vadd.f32 %v263_v50, %v1651_v47  ;;  %v1679_v50 = vpop.permute.xlu0 %130 }
  0xe4   :  { %1290 = vmatpush3.bf16.msra.mxu1 %v1289_v52  ;;  %v319_v58 = vmax.f32 %v264_v53, 0.0  ;;  %v1682_v52 = vpop.permute.xlu1 %135 }
  0xe5   :  { %v268_v55 = vpop.f32.mrb[6].mxu0  ;;  %1291 = vmatprep.subr.bf16.mxu1 %v1401_v38 }
  0xe6   :  { %v269_v56 = vadd.f32 %v268_v55, %v1654_v54  ;;  %v1091_v57 = vpop.f32.mrb[7].mxu0 }
  0xe8   :  { %v320_v59 = vmax.f32 %v269_v56, 0.0 }
  0xe9   :  { %v273_v60 = vpop.f32.mrb[8].mxu0 }
  0xea   :  { %v1292_v61 = vpack.c.bf16 %v320_v59, %v319_v58  ;;  %v1094_v62 = vpop.f32.mrb[9].mxu0  ;;  %v274_v0 = vadd.f32 %v273_v60, %v1658_v63  ;;  %v1686_v59 = vpop.permute.xlu0 %140 }
  0xec   :  { %1293 = vmatpush3.bf16.msra.mxu1 %v1292_v61  ;;  %v321_v8 = vmax.f32 %v274_v0, 0.0 }
  0xed   :  { %v278_v4 = vpop.f32.mrb[10].mxu0  ;;  %1294 = vmatprep.subr.bf16.mxu1 %v1401_v38 }
  0xee   :  { %v279_v6 = vadd.f32 %v278_v4, %v1661_v1  ;;  %v1097_v7 = vpop.f32.mrb[11].mxu0 }
  0xef   :  { %v587_v7 = vld [vmem:[%s1937_s1] sm:$0x3f] }
  0xf0   :  { %v322_v9 = vmax.f32 %v279_v6, 0.0  ;;  %v1693_v6 = vld [vmem:[%s1940_s4] sm:$0xff] }
  0xf1   :  { %v283_v11 = vpop.f32.mrb[12].mxu0 }
  0xf2   :  { %v1295_v12 = vpack.c.bf16 %v322_v9, %v321_v8  ;;  %v1100_v14 = vpop.f32.mrb[13].mxu0  ;;  %v284_v17 = vadd.f32 %v283_v11, %v1665_v15  ;;  %v1707_v8 = vld [vmem:[%s1940_s4 + $0x8] sm:$0xff]  ;;  %v1718_v9 = vld [vmem:[%s1940_s4 + $0x10] sm:$0xff]  ;;  %v1727_v11 = vld [vmem:[%s1940_s4 + $0x18] sm:$0xff] }
  0xf3   :  { %v1745_v14 = vld [vmem:[%s1940_s4 + $0x28] sm:$0xff] }
  0xf4   :  { %1296 = vmatpush3.bf16.msra.mxu1 %v1295_v12  ;;  %v323_v24 = vmax.f32 %v284_v17, 0.0  ;;  %v1736_v12 = vld [vmem:[%s1940_s4 + $0x20] sm:$0xff]  ;;  %v1754_v17 = vld [vmem:[%s1940_s4 + $0x30] sm:$0x3] }
  0xf5   :  { %v288_v20 = vpop.f32.mrb[14].mxu0  ;;  %1297 = vmatprep.subr.bf16.mxu1 %v1401_v38 }
  0xf6   :  { %v289_v21 = vadd.f32 %v288_v20, %v1668_v18  ;;  %v1103_v23 = vpop.f32.mrb[15].mxu0 }
  0xf8   :  { %v324_v26 = vmax.f32 %v289_v21, 0.0 }
  0xf9   :  { %v293_v27 = vpop.f32.mrb[16].mxu0 }
  0xfa   :  { %v1298_v29 = vpack.c.bf16 %v324_v26, %v323_v24  ;;  %v1106_v30 = vpop.f32.mrb[17].mxu0  ;;  %v294_v33 = vadd.f32 %v293_v27, %v1672_v32 }
  0xfc   :  { %1299 = vmatpush3.bf16.msra.mxu1 %v1298_v29  ;;  %v325_v44 = vmax.f32 %v294_v33, 0.0 }
  0xfd   :  { %v298_v40 = vpop.f32.mrb[18].mxu0  ;;  %1300 = vmatprep.subr.bf16.mxu1 %v1401_v38 }
  0xfe   :  { %v299_v41 = vadd.f32 %v298_v40, %v1675_v35  ;;  %v1109_v42 = vpop.f32.mrb[19].mxu0 }
 0x100   :  { %v326_v45 = vmax.f32 %v299_v41, 0.0 }
 0x101   :  { %v303_v46 = vpop.f32.mrb[20].mxu0 }
 0x102   :  { %v1301_v48 = vpack.c.bf16 %v326_v45, %v325_v44  ;;  %v1112_v49 = vpop.f32.mrb[21].mxu0  ;;  %v304_v51 = vadd.f32 %v303_v46, %v1679_v50 }
 0x104   :  { %1302 = vmatpush3.bf16.msra.mxu1 %v1301_v48  ;;  %v327_v57 = vmax.f32 %v304_v51, 0.0 }
 0x105   :  { %v308_v53 = vpop.f32.mrb[22].mxu0  ;;  %1303 = vmatprep.subr.bf16.mxu1 %v1401_v38 }
 0x106   :  { %v309_v55 = vadd.f32 %v308_v53, %v1682_v52  ;;  %v1115_v56 = vpop.f32.mrb[23].mxu0 }
 0x108   :  { %v328_v58 = vmax.f32 %v309_v55, 0.0 }
 0x109   :  { %v313_v60 = vpop.f32.mrb[24].mxu0 }
 0x10a   :  { %v1304_v61 = vpack.c.bf16 %v328_v58, %v327_v57  ;;  %v314_v62 = vadd.f32 %v313_v60, %v1686_v59  ;;  %v1118_v0 = vpop.f32.mrb[25].mxu0 }
 0x10c   :  { %1305 = vmatpush3.bf16.msra.mxu1 %v1304_v61  ;;  %v329_v4 = vmax.f32 %v314_v62, 0.0 }
 0x10d   :  { %1143 = vmatprep.subr.mxu1 %v1398_v3 }
 0x110   :  { %1144 = vmatpush3.msk.msra.mxu1 %vm387_vm3, %v329_v4  ;;  %v1839_v4 = vld [vmem:[%s1942_s6] sm:$0x1]  ;;  %s1402_s6 = smov [#allocation3]  }
 0x111   :  { %1146 = vmatmul.mubr.msk.f32.vlgmr.msra.gmra.mrb[0].mxu1 %vm365_vm4, %v1693_v6  ;;  %1183 = vmatprep.subr.mxu1 %v1398_v3  ;;  %s924_s20 = sshll.u32 %s1402_s6, 4  ;;  %s925_s20 = int_to_ptr.vmem [resolvable:$true] %s924_s20 }
 0x112   :  { %1148 = vmatprep.mubr.msk.f32.mxu1 %vm1399_vm1, %v1398_v3  ;;  %1184 = vmatpush3.msk.msra.mxu1 %vm183_vm0, %v587_v7  ;;  %s1350_s21 = scalar_lea.vmem %s925_s20, 16  ;;  %s1354_s22 = scalar_lea.vmem %s925_s20, 32 }
 0x113   :  { %1333 = vmatprep.subr.bf16.mxu1 %v1401_v38  ;;  %p1351_p0 = scmp.ne.s32.totalorder %s925_s20, %s1350_s21  ;;  %p1355_p1 = scmp.lt.s32.totalorder %s925_s20, %s925_s20 }
 0x114   :  { %p1356_p2 = scmp.lt.s32.totalorder %s1354_s22, %s1350_s21 }
 0x115   :  { %1149 = vmatmul.mubr.msk.f32.gmra.mrb[2].mxu1 %vm365_vm4, %v1707_v8 }
 0x116   :  { %1151 = vmatprep.mubr.msk.f32.mxu1 %vm1399_vm1, %v1398_v3  ;;  %p1357_p3 = por %p1356_p2, %p1355_p1 }
 0x118   :  { %p1358_p4 = pnand %p1357_p3, %p1351_p0 }
 0x119   :  { %1152 = vmatmul.mubr.msk.f32.gmra.mrb[4].mxu1 %vm365_vm4, %v1718_v9 }
 0x11a   :  { %1154 = vmatprep.mubr.msk.f32.mxu1 %vm1399_vm1, %v1398_v3 }
 0x11d   :  { %1155 = vmatmul.mubr.msk.f32.gmra.mrb[6].mxu1 %vm365_vm4, %v1727_v11 }
 0x11e   :  { %1157 = vmatprep.mubr.msk.f32.mxu1 %vm1399_vm1, %v1398_v3 }
 0x121   :  { %1158 = vmatmul.mubr.msk.f32.gmra.mrb[8].mxu1 %vm365_vm4, %v1736_v12 }
 0x122   :  { %1160 = vmatprep.mubr.msk.f32.mxu1 %vm1399_vm1, %v1398_v3 }
 0x125   :  { %1161 = vmatmul.mubr.msk.f32.gmra.mrb[10].mxu1 %vm365_vm4, %v1745_v14 }
 0x126   :  { %1163 = vmatprep.mubr.msk.f32.mxu1 %vm1399_vm1, %v1398_v3 }
 0x129   :  { %1164 = vmatmul.mubr.msk.f32.gmra.mrb[12].mxu1 %vm365_vm4, %v1754_v17 }
 0x12a   :  { %1185 = vmatprep.mubr.msk.f32.mxu1 %vm1399_vm1, %v1398_v3 }
 0x12d   :  { %1186 = vmatmul.mubr.msk.f32.vlgmr.msra.gmra.mrb[14].mxu1 %vm143_vm2, %v1463_v2 }
 0x12e   :  { %1188 = vmatprep.mubr.msk.f32.mxu1 %vm1399_vm1, %v1398_v3 }
 0x131   :  { %1189 = vmatmul.mubr.msk.f32.gmra.mrb[16].mxu1 %vm143_vm2, %v1476_v5 }
 0x132   :  { %1191 = vmatprep.mubr.msk.f32.mxu1 %vm1399_vm1, %v1398_v3 }
 0x135   :  { %1192 = vmatmul.mubr.msk.f32.gmra.mrb[18].mxu1 %vm143_vm2, %v1499_v10  ;;  %v1812_v10 = vpop.permute.xlu1 %332 }
 0x136   :  { %1194 = vmatprep.mubr.msk.f32.mxu1 %vm1399_vm1, %v1398_v3 }
 0x139   :  { %1195 = vmatmul.mubr.msk.f32.gmra.mrb[20].mxu1 %vm143_vm2, %v1514_v13  ;;  %v1818_v20 = vpop.permute.xlu1 %342 }
 0x13a   :  { %1197 = vmatprep.mubr.msk.f32.mxu1 %vm1399_vm1, %v1398_v3 }
 0x13d   :  { %1198 = vmatmul.mubr.msk.f32.gmra.mrb[22].mxu1 %vm143_vm2, %v1529_v16  ;;  %v1815_v16 = vpop.permute.xlu0 %337  ;;  %v1825_v42 = vpop.permute.xlu1 %352 }
 0x13e   :  { %1200 = vmatprep.mubr.msk.f32.mxu1 %vm1399_vm1, %v1398_v3 }
 0x141   :  { %1201 = vmatmul.mubr.msk.f32.gmra.mrb[24].mxu1 %vm143_vm2, %v1544_v19  ;;  %v1821_v23 = vpop.permute.xlu0 %347  ;;  %v1832_v55 = vpop.permute.xlu1 %362 }
 0x142   :  { %1203 = vmatprep.mubr.msk.f32.mxu1 %vm1399_vm1, %v1398_v3 }
 0x145   :  { %1204 = vmatmul.mubr.msk.f32.gmra.mrb[26].mxu1 %vm143_vm2, %v1559_v22  ;;  %v1828_v45 = vpop.permute.xlu0 %357 }
 0x146   :  { %1206 = vmatprep.mubr.msk.f32.mxu1 %vm1399_vm1, %v1398_v3 }
 0x149   :  { %1207 = vmatmul.mubr.msk.f32.gmra.mrb[28].mxu1 %vm143_vm2, %v1574_v25 }
 0x14a   :  { %1209 = vmatprep.mubr.msk.f32.mxu1 %vm1399_vm1, %v1398_v3 }
 0x14d   :  { %1210 = vmatmul.mubr.msk.f32.gmra.mrb[30].mxu1 %vm143_vm2, %v1589_v28 }
 0x14e   :  { %1212 = vmatprep.mubr.msk.f32.mxu1 %vm1399_vm1, %v1398_v3 }
 0x151   :  { %1213 = vmatmul.mubr.msk.f32.gmra.mrb[32].mxu1 %vm143_vm2, %v1604_v31 }
 0x152   :  { %1215 = vmatprep.mubr.msk.f32.mxu1 %vm1399_vm1, %v1398_v3 }
 0x155   :  { %1216 = vmatmul.mubr.msk.f32.gmra.mrb[34].mxu1 %vm143_vm2, %v1619_v34 }
 0x156   :  { %1218 = vmatprep.mubr.msk.f32.mxu1 %vm1399_vm1, %v1398_v3 }
 0x159   :  { %1219 = vmatmul.mubr.msk.f32.gmra.mrb[36].mxu1 %vm143_vm2, %v1628_v36 }
 0x15a   :  { %1221 = vmatprep.mubr.msk.f32.mxu1 %vm1399_vm1, %v1398_v3 }
 0x15d   :  { %1222 = vmatmul.mubr.msk.f32.gmra.mrb[38].mxu1 %vm143_vm2, %v1637_v37 }
 0x15e   :  { %1285 = vmatprep.mubr.msk.f32.mxu1 %vm1399_vm1, %v1398_v3 }
 0x1e4   :  { %v457_v2 = vpop.f32.mrb[0].mxu1 }
 0x1e5   :  { %v1147_v5 = vpop.f32.mrb[1].mxu1  ;;  %v458_v13 = vadd.f32 %v457_v2, %v1812_v10 }
 0x1e7   :  { %v491_v28 = vmax.f32 %v458_v13, 0.0 }
 0x1e8   :  { %v462_v19 = vpop.f32.mrb[2].mxu1 }
 0x1e9   :  { %v463_v22 = vadd.f32 %v462_v19, %v1815_v16  ;;  %v1150_v25 = vpop.f32.mrb[3].mxu1 }
 0x1eb   :  { %v492_v31 = vmax.f32 %v463_v22, 0.0 }
 0x1ec   :  { %v467_v34 = vpop.f32.mrb[4].mxu1 }
 0x1ed   :  { %v1307_v36 = vpack.c.bf16 %v492_v31, %v491_v28  ;;  %v1153_v37 = vpop.f32.mrb[5].mxu1  ;;  %v468_v21 = vadd.f32 %v467_v34, %v1818_v20 }
 0x1ef   :  { %1308 = vmatpush3.bf16.msra.mxu0 %v1307_v36  ;;  %v493_v29 = vmax.f32 %v468_v21, 0.0 }
 0x1f0   :  { %v472_v24 = vpop.f32.mrb[6].mxu1  ;;  %1309 = vmatprep.subr.bf16.mxu0 %v1401_v38 }
 0x1f1   :  { %v473_v26 = vadd.f32 %v472_v24, %v1821_v23  ;;  %v1156_v27 = vpop.f32.mrb[7].mxu1 }
 0x1f3   :  { %v494_v30 = vmax.f32 %v473_v26, 0.0 }
 0x1f4   :  { %v477_v33 = vpop.f32.mrb[8].mxu1 }
 0x1f5   :  { %v1310_v40 = vpack.c.bf16 %v494_v30, %v493_v29  ;;  %v1159_v41 = vpop.f32.mrb[9].mxu1  ;;  %v478_v44 = vadd.f32 %v477_v33, %v1825_v42 }
 0x1f7   :  { %1311 = vmatpush3.bf16.msra.mxu0 %v1310_v40  ;;  %v495_v51 = vmax.f32 %v478_v44, 0.0 }
 0x1f8   :  { %v482_v46 = vpop.f32.mrb[10].mxu1  ;;  %1312 = vmatprep.subr.bf16.mxu0 %v1401_v38 }
 0x1f9   :  { %v483_v48 = vadd.f32 %v482_v46, %v1828_v45  ;;  %v1162_v49 = vpop.f32.mrb[11].mxu1 }
 0x1fb   :  { %v496_v53 = vmax.f32 %v483_v48, 0.0 }
 0x1fc   :  { %v487_v56 = vpop.f32.mrb[12].mxu1 }
 0x1fd   :  { %v1313_v57 = vpack.c.bf16 %v496_v53, %v495_v51  ;;  %v488_v58 = vadd.f32 %v487_v56, %v1832_v55  ;;  %v1165_v60 = vpop.f32.mrb[13].mxu1 }
 0x1ff   :  { %1314 = vmatpush3.bf16.msra.mxu0 %v1313_v57  ;;  %v497_v62 = vmax.f32 %v488_v58, 0.0 }
 0x200   :  { %v657_v61 = vpop.f32.mrb[14].mxu1  ;;  %1178 = vmatprep.subr.mxu0 %v1398_v3 }
 0x201   :  { %v1187_v0 = vpop.f32.mrb[15].mxu1  ;;  %v658_v7 = vadd.f32 %v657_v61, %v1645_v39 }
 0x203   :  { %1179 = vmatpush3.msk.msra.mxu0 %vm511_vm5, %v497_v62  ;;  %v721_v19 = vmax.f32 %v658_v7, 0.0 }
 0x204   :  { %1181 = vmatmul.mubr.msk.f32.vlgmr.msra.gmra.mrb[26].mxu0 %vm507_vm6, %v1839_v4  ;;  %v662_v2 = vpop.f32.mrb[16].mxu1  ;;  %1315 = vmatprep.subr.bf16.mxu0 %v1401_v38 }
 0x205   :  { %v663_v5 = vadd.f32 %v662_v2, %v1648_v43  ;;  %v1190_v13 = vpop.f32.mrb[17].mxu1  ;;  %1250 = vmatprep.mubr.msk.f32.mxu0 %vm1399_vm1, %v1398_v3 }
 0x207   :  { %v722_v22 = vmax.f32 %v663_v5, 0.0 }
 0x208   :  { %v667_v25 = vpop.f32.mrb[18].mxu1 }
 0x209   :  { %v1316_v28 = vpack.c.bf16 %v722_v22, %v721_v19  ;;  %v1193_v31 = vpop.f32.mrb[19].mxu1  ;;  %v668_v39 = vadd.f32 %v667_v25, %v1651_v47 }
 0x20b   :  { %1317 = vmatpush3.bf16.msra.mxu0 %v1316_v28  ;;  %v723_v21 = vmax.f32 %v668_v39, 0.0 }
 0x20c   :  { %v672_v34 = vpop.f32.mrb[20].mxu1  ;;  %1318 = vmatprep.subr.bf16.mxu0 %v1401_v38 }
 0x20d   :  { %v673_v36 = vadd.f32 %v672_v34, %v1654_v54  ;;  %v1196_v37 = vpop.f32.mrb[21].mxu1 }
 0x20f   :  { %v724_v43 = vmax.f32 %v673_v36, 0.0 }
 0x210   :  { %v677_v24 = vpop.f32.mrb[22].mxu1 }
 0x211   :  { %v1319_v26 = vpack.c.bf16 %v724_v43, %v723_v21  ;;  %v1199_v27 = vpop.f32.mrb[23].mxu1  ;;  %v678_v29 = vadd.f32 %v677_v24, %v1658_v63 }
 0x213   :  { %1320 = vmatpush3.bf16.msra.mxu0 %v1319_v26  ;;  %v725_v40 = vmax.f32 %v678_v29, 0.0 }
 0x214   :  { %v682_v30 = vpop.f32.mrb[24].mxu1  ;;  %1321 = vmatprep.subr.bf16.mxu0 %v1401_v38 }
 0x215   :  { %v683_v47 = vadd.f32 %v682_v30, %v1661_v1  ;;  %v1202_v33 = vpop.f32.mrb[25].mxu1 }
 0x217   :  { %v726_v41 = vmax.f32 %v683_v47, 0.0 }
 0x218   :  { %v687_v44 = vpop.f32.mrb[26].mxu1 }
 0x219   :  { %v1322_v46 = vpack.c.bf16 %v726_v41, %v725_v40  ;;  %v1205_v54 = vpop.f32.mrb[27].mxu1  ;;  %v688_v48 = vadd.f32 %v687_v44, %v1665_v15 }
 0x21b   :  { %1323 = vmatpush3.bf16.msra.mxu0 %v1322_v46  ;;  %v727_v53 = vmax.f32 %v688_v48, 0.0 }
 0x21c   :  { %v692_v49 = vpop.f32.mrb[28].mxu1  ;;  %1324 = vmatprep.subr.bf16.mxu0 %v1401_v38 }
 0x21d   :  { %v693_v63 = vadd.f32 %v692_v49, %v1668_v18  ;;  %v1208_v51 = vpop.f32.mrb[29].mxu1 }
 0x21f   :  { %v728_v56 = vmax.f32 %v693_v63, 0.0 }
 0x220   :  { %v697_v57 = vpop.f32.mrb[30].mxu1 }
 0x221   :  { %v1325_v58 = vpack.c.bf16 %v728_v56, %v727_v53  ;;  %v1211_v1 = vpop.f32.mrb[31].mxu1  ;;  %v698_v60 = vadd.f32 %v697_v57, %v1672_v32 }
 0x223   :  { %1326 = vmatpush3.bf16.msra.mxu0 %v1325_v58  ;;  %v729_v0 = vmax.f32 %v698_v60, 0.0 }
 0x224   :  { %v702_v61 = vpop.f32.mrb[32].mxu1  ;;  %1327 = vmatprep.subr.bf16.mxu0 %v1401_v38 }
 0x225   :  { %v703_v15 = vadd.f32 %v702_v61, %v1675_v35  ;;  %v1214_v62 = vpop.f32.mrb[33].mxu1 }
 0x227   :  { %v730_v7 = vmax.f32 %v703_v15, 0.0 }
 0x228   :  { %v707_v2 = vpop.f32.mrb[34].mxu1 }
 0x229   :  { %v1328_v5 = vpack.c.bf16 %v730_v7, %v729_v0  ;;  %v1217_v18 = vpop.f32.mrb[35].mxu1  ;;  %v708_v13 = vadd.f32 %v707_v2, %v1679_v50  ;;  %v503_v50 = vlaneseq }
 0x22b   :  { %1329 = vmatpush3.bf16.msra.mxu0 %v1328_v5  ;;  %v731_v25 = vmax.f32 %v708_v13, 0.0 }
 0x22c   :  { %v712_v19 = vpop.f32.mrb[36].mxu1  ;;  %1330 = vmatprep.subr.bf16.mxu0 %v1401_v38 }
 0x22d   :  { %v713_v32 = vadd.f32 %v712_v19, %v1682_v52  ;;  %v1220_v22 = vpop.f32.mrb[37].mxu1  ;;  %v504_v52 = vshrl.u32 %v503_v50, 7 }
 0x22f   :  { %v732_v28 = vmax.f32 %v713_v32, 0.0 }
 0x230   :  { %v717_v31 = vpop.f32.mrb[38].mxu1 }
 0x231   :  { %v1331_v39 = vpack.c.bf16 %v732_v28, %v731_v25  ;;  %v718_v35 = vadd.f32 %v717_v31, %v1686_v59  ;;  %v1223_v34 = vpop.f32.mrb[39].mxu1  ;;  %v505_v59 = vsub.s32 0, %v504_v52 }
 0x233   :  { %1332 = vmatpush3.bf16.msra.mxu0 %v1331_v39  ;;  %v733_v36 = vmax.f32 %v718_v35, 0.0 }
 0x234   :  { %1248 = vmatprep.subr.mxu0 %v1398_v3 }
 0x237   :  { %1249 = vmatpush3.msk.msra.mxu0 %vm387_vm3, %v733_v36 }
 0x238   :  { %1251 = vmatmul.mubr.msk.f32.vlgmr.msra.gmra.mrb[28].mxu0 %vm365_vm4, %v1693_v6  ;;  %v501_v6 = vpop.permute.xlu0 %500 }
 0x239   :  { %1253 = vmatprep.mubr.msk.f32.mxu0 %vm1399_vm1, %v1398_v3 }
 0x23c   :  { %1254 = vmatmul.mubr.msk.f32.gmra.mrb[30].mxu0 %vm365_vm4, %v1707_v8  ;;  %v1893_v8 = vrot.slane %v501_v6, %v505_v59 }
 0x23d   :  { %1256 = vmatprep.mubr.msk.f32.mxu0 %vm1399_vm1, %v1398_v3 }
 0x240   :  { %1257 = vmatmul.mubr.msk.f32.gmra.mrb[32].mxu0 %vm365_vm4, %v1718_v9 }
 0x241   :  { %1259 = vmatprep.mubr.msk.f32.mxu0 %vm1399_vm1, %v1398_v3 }
 0x244   :  { %1260 = vmatmul.mubr.msk.f32.gmra.mrb[34].mxu0 %vm365_vm4, %v1727_v11 }
 0x245   :  { %1262 = vmatprep.mubr.msk.f32.mxu0 %vm1399_vm1, %v1398_v3 }
 0x248   :  { %1263 = vmatmul.mubr.msk.f32.gmra.mrb[36].mxu0 %vm365_vm4, %v1736_v12 }
 0x249   :  { %1265 = vmatprep.mubr.msk.f32.mxu0 %vm1399_vm1, %v1398_v3 }
 0x24c   :  { %1266 = vmatmul.mubr.msk.f32.gmra.mrb[38].mxu0 %vm365_vm4, %v1745_v14 }
 0x24d   :  { %1268 = vmatprep.mubr.msk.f32.mxu0 %vm1399_vm1, %v1398_v3 }
 0x250   :  { %1269 = vmatmul.mubr.msk.f32.gmra.mrb[40].mxu0 %vm365_vm4, %v1754_v17 }
 0x2d7   :  { %v581_v9 = vpop.f32.mrb[26].mxu0 }
 0x2d8   :  { %v582_v11 = vadd.f32 %v581_v9, %v1893_v8  ;;  %v1182_v12 = vpop.f32.mrb[27].mxu0 }
 0x2da   :  { %586 = vst.msk [vmem:[#allocation3] sm:$0x1] %vm585_vm7, %v582_v11 }
 0x30b   :  { %v803_v14 = vpop.f32.mrb[28].mxu0 }
 0x30c   :  { %v1252_v37 = vpop.f32.mrb[29].mxu0  ;;  %v804_v21 = vadd.f32 %v803_v14, %v1812_v10 }
 0x30e   :  { %v837_v26 = vmax.f32 %v804_v21, 0.0 }
 0x30f   :  { %v808_v43 = vpop.f32.mrb[30].mxu0 }
 0x310   :  { %v809_v17 = vadd.f32 %v808_v43, %v1815_v16  ;;  %v1255_v24 = vpop.f32.mrb[31].mxu0 }
 0x312   :  { %v838_v27 = vmax.f32 %v809_v17, 0.0 }
 0x313   :  { %v813_v29 = vpop.f32.mrb[32].mxu0 }
 0x314   :  { %v1334_v30 = vpack.c.bf16 %v838_v27, %v837_v26  ;;  %v1258_v47 = vpop.f32.mrb[33].mxu0  ;;  %v814_v33 = vadd.f32 %v813_v29, %v1818_v20 }
 0x316   :  { %1335 = vmatpush3.bf16.msra.mxu1 %v1334_v30  ;;  %v839_v46 = vmax.f32 %v814_v33, 0.0 }
 0x317   :  { %v818_v40 = vpop.f32.mrb[34].mxu0  ;;  %1336 = vmatprep.subr.bf16.mxu1 %v1401_v38 }
 0x318   :  { %v819_v41 = vadd.f32 %v818_v40, %v1821_v23  ;;  %v1261_v44 = vpop.f32.mrb[35].mxu0 }
 0x31a   :  { %v840_v10 = vmax.f32 %v819_v41, 0.0 }
 0x31b   :  { %v823_v54 = vpop.f32.mrb[36].mxu0 }
 0x31c   :  { %v1337_v48 = vpack.c.bf16 %v840_v10, %v839_v46  ;;  %v1264_v16 = vpop.f32.mrb[37].mxu0  ;;  %v824_v49 = vadd.f32 %v823_v54, %v1825_v42 }
 0x31e   :  { %1338 = vmatpush3.bf16.msra.mxu1 %v1337_v48  ;;  %v841_v53 = vmax.f32 %v824_v49, 0.0 }
 0x31f   :  { %v828_v63 = vpop.f32.mrb[38].mxu0  ;;  %1339 = vmatprep.subr.bf16.mxu1 %v1401_v38 }
 0x320   :  { %v829_v20 = vadd.f32 %v828_v63, %v1828_v45  ;;  %v1267_v51 = vpop.f32.mrb[39].mxu0 }
 0x322   :  { %v842_v56 = vmax.f32 %v829_v20, 0.0 }
 0x323   :  { %v833_v57 = vpop.f32.mrb[40].mxu0 }
 0x324   :  { %v1340_v58 = vpack.c.bf16 %v842_v56, %v841_v53  ;;  %v834_v23 = vadd.f32 %v833_v57, %v1832_v55  ;;  %v1270_v1 = vpop.f32.mrb[41].mxu0 }
 0x326   :  { %1341 = vmatpush3.bf16.msra.mxu1 %v1340_v58  ;;  %v843_v60 = vmax.f32 %v834_v23, 0.0 }
 0x327   :  { %1283 = vmatprep.subr.mxu1 %v1398_v3 }
 0x32a   :  { %1284 = vmatpush3.msk.msra.mxu1 %vm511_vm5, %v843_v60 }
 0x32b   :  { %1286 = vmatmul.mubr.msk.f32.vlgmr.msra.gmra.mrb[40].mxu1 %vm507_vm6, %v1839_v4 }
 0x32c   :  { %1361 = shalt.err (!%p1358_p4)
}
 0x32d   :  { %s1362_s25 = scalar_lea.hbm %s1944_s8, 16 }
 0x32e   :  { %p1363_p5 = scmp.ne.s32.totalorder %s1944_s8, %s1362_s25  ;;  %p1366_p6 = scmp.lt.u32.totalorder %s1362_s25, %s1944_s8 }
 0x330   :  { %p1368_p7 = pnand %p1366_p6, %p1363_p5 }
 0x332   :  { %1371 = shalt.err (!%p1368_p7)
}
 0x333   :  { %927 = dma.vmem_to_hbm [thread:$0]  %s925_s20, 16, %s1944_s8, [#allocation4]  }
 0x334   :  { %s1403_s30 = smov [#allocation5]  }
 0x335   :  { %s934_s10 = sshll.u32 %s1403_s30, 4  ;;  %s935_s10 = int_to_ptr.vmem [resolvable:$true] %s934_s10 }
 0x336   :  { %s1372_s11 = scalar_lea.vmem %s935_s10, 16  ;;  %s1376_s12 = scalar_lea.vmem %s935_s10, 32 }
 0x337   :  { %p1373_p8 = scmp.ne.s32.totalorder %s935_s10, %s1372_s11  ;;  %p1377_p9 = scmp.lt.s32.totalorder %s935_s10, %s935_s10 }
 0x338   :  { %p1378_p10 = scmp.lt.s32.totalorder %s1376_s12, %s1372_s11 }
 0x33a   :  { %p1379_p11 = por %p1378_p10, %p1377_p9 }
 0x33c   :  { %p1380_p12 = pnand %p1379_p11, %p1373_p8 }
 0x3fe   :  { %v913_v3 = vpop.f32.mrb[40].mxu1 }
 0x3ff   :  { %v914_v38 = vadd.f32 %v913_v3, %v1893_v8  ;;  %v1287_v42 = vpop.f32.mrb[41].mxu1 }
 0x401   :  { %917 = vst.msk [vmem:[#allocation5] sm:$0x1] %vm585_vm7, %v914_v38 }
 0x402   :  { %1383 = shalt.err (!%p1380_p12)
}
 0x403   :  { %s1384_s8 = scalar_lea.hbm %s1945_s9, 16 }
 0x404   :  { %p1385_p13 = scmp.ne.s32.totalorder %s1945_s9, %s1384_s8  ;;  %p1388_p0 = scmp.lt.u32.totalorder %s1384_s8, %s1945_s9 }
 0x406   :  { %p1390_p1 = pnand %p1388_p0, %p1385_p13 }
 0x408   :  { %1393 = shalt.err (!%p1390_p1)
}
 0x409   :  { %937 = dma.vmem_to_hbm [thread:$0]  %s935_s10, 16, %s1945_s9, [#allocation6]  }
 0x40a   :  { %1394 = dma.done.wait [#allocation4], 16  }
 0x40b   :  { %1395 = vsyncadd [#allocation4], 4294967280 }
 0x40c   :  { %1396 = dma.done.wait [#allocation6], 16  }
 0x40d   :  { %1397 = vsyncadd [#allocation6], 4294967280 }
 0x40e   :  { %944 = vsyncpa [#allocation4], 1 }
 0x40f   :  { %945 = vsyncpa [#allocation6], 1 }

</bundles_post_ra>
